<compile_context>
chip_gen: v5e
topology: v5e:2x2
jax: 0.10.0
libtpu: 0.0.40
codegen_flags: <defaults>
</compile_context>

<pallas_src>
import numpy as np
import jax
import jax.numpy as jnp
from jax.experimental import pallas as pl
from jax.experimental.pallas import tpu as pltpu


def ccn1d_kernel(adj_ref, gp0_ref, gpt0_ref, bd0_ref, mask_ref, maskt_ref,
                 we1r_ref, we1s_ref, we2r_ref, we2s_ref,
                 b1_ref, b2_ref, fcw0_ref, fcw1_ref, fcw2_ref, fcb_ref,
                 out_ref):
    f32 = jnp.float32

    def mm(a, b):
        return jnp.dot(a, b, preferred_element_type=f32)

    adj = adj_ref[0]        # (n, n)            0/1 adjacency
    gp0 = gp0_ref[0]        # (n, c0*n)         lane-packed level-0 features
    gpt0 = gpt0_ref[0]      # (n, c0*n)         per-channel transposed copy
    bd0 = bd0_ref[0]        # (c0*n, c0*n)      block-diag(adj.T), one block/channel
    mask = mask_ref[0]      # (n, h*n)          adj tiled per hidden channel
    maskT = maskt_ref[0]    # (n, h*n)          adj.T tiled per hidden channel
    b1 = b1_ref[...]        # (1, h*n)
    b2 = b2_ref[...]        # (1, h*n)

    # ---- layer 1 -----------------------------------------------------------
    # Channel mixing folded into matmuls vs kron(W.T, I_n); by associativity
    # adj @ (Gp @ Wr + GpT @ Ws) == (adj @ Gp) @ Wr + (adj @ GpT) @ Ws,
    # i.e. row- and column-contraction + linear layer in 3 matmuls.
    mixed1 = mm(gp0, we1r_ref[...]) + mm(gpt0, we1s_ref[...])       # (n, h*n)
    g1 = jnp.maximum(mm(adj, mixed1) + b1, 0.0) * mask

    # Transposed copy of the layer-1 output (needed so layer 2's column
    # contraction also stays a single transpose-free matmul).
    rt1 = mm(gpt0, bd0)     # blocks = (adj @ G0_c)^T
    st1 = mm(gp0, bd0)      # blocks = (adj @ G0_c^T)^T
    g1t = jnp.maximum(mm(rt1, we1r_ref[...]) + mm(st1, we1s_ref[...]) + b1,
                      0.0) * maskT

    # ---- layer 2 (only the untransposed features are needed) ---------------
    mixed2 = mm(g1, we2r_ref[...]) + mm(g1t, we2s_ref[...])
    g2 = jnp.maximum(mm(adj, mixed2) + b2, 0.0) * mask

    # ---- graph readout fused with the final fc layer ------------------------
    # fc(concat_level[ sum_{i,v} G_c ]) = sum_level sum(G_packed * fcw_rep) + fcb
    part = (jnp.sum(gp0 * fcw0_ref[...], axis=1, keepdims=True)
            + jnp.sum(g1 * fcw1_ref[...], axis=1, keepdims=True)
            + jnp.sum(g2 * fcw2_ref[...], axis=1, keepdims=True))    # (n, 1)
    tot = jnp.sum(part, axis=0, keepdims=True) + fcb_ref[...]        # (1, 1)
    out_ref[0] = tot


def _forward_batched(X, adj, w1, b1, w2, b2, fcw, fcb):
    """X: (B, n, C0); adj: (B, n, n) 0/1.  Returns (B, 1)."""
    f32 = jnp.float32
    X = X.astype(f32)
    adj = adj.astype(f32)
    B, n, c0 = X.shape
    h = w1.shape[0]

    adjT = jnp.swapaxes(adj, 1, 2)

    # --- host-side layout plumbing (tiny, vectorized over the batch) --------
    # gp0[g, i, c*n + v] = adj[g, i, v] * X[g, i, c]
    gp0 = (adj[:, :, None, :] * X[:, :, :, None]).reshape(B, n, c0 * n)
    # gpt0 block c = (gp0 block c)^T
    gpt0 = (adjT[:, :, None, :]
            * jnp.swapaxes(X, 1, 2)[:, None, :, :]).reshape(B, n, c0 * n)
    # Block-diagonal replicas of adj.T (one block per input channel) so the
    # per-channel right-multiplication by adj.T is ONE matmul in the kernel.
    bd0 = jnp.einsum("ab,gij->gaibj", jnp.eye(c0, dtype=f32), adjT)
    bd0 = bd0.reshape(B, c0 * n, c0 * n)
    # Neighbour masks, tiled once per hidden channel along the lane axis.
    mask = jnp.tile(adj, (1, 1, h))        # (B, n, h*n)
    maskT = jnp.tile(adjT, (1, 1, h))

    # Kronecker-expanded linear-layer weights (shared across the batch):
    # (packed @ kron(Wpart.T, I_n)) == per-channel weighted sum of lane blocks.
    eye_n = jnp.eye(n, dtype=f32)
    w1f = w1.astype(f32)
    w2f = w2.astype(f32)
    we1r = jnp.kron(w1f[:, :c0].T, eye_n)          # (c0*n, h*n)
    we1s = jnp.kron(w1f[:, c0:].T, eye_n)          # (c0*n, h*n)
    we2r = jnp.kron(w2f[:, :h].T, eye_n)           # (h*n, h*n)
    we2s = jnp.kron(w2f[:, h:].T, eye_n)           # (h*n, h*n)
    b1l = jnp.repeat(b1.astype(f32), n)[None, :]   # (1, h*n)
    b2l = jnp.repeat(b2.astype(f32), n)[None, :]
    fcwf = fcw.reshape(-1).astype(f32)
    fcw0 = jnp.repeat(fcwf[:c0], n)[None, :]                # (1, c0*n)
    fcw1 = jnp.repeat(fcwf[c0:c0 + h], n)[None, :]          # (1, h*n)
    fcw2 = jnp.repeat(fcwf[c0 + h:c0 + 2 * h], n)[None, :]  # (1, h*n)
    fcb2d = fcb.reshape(1, 1).astype(f32)

    def graph_spec(*shape):      # one block per graph along the batch grid
        return pl.BlockSpec((1,) + shape, lambda g: (g, 0, 0))

    def shared_spec(*shape):     # weights shared by every grid step
        return pl.BlockSpec(shape, lambda g: (0, 0))

    out = pl.pallas_call(
        ccn1d_kernel,
        grid=(B,),
        out_shape=jax.ShapeDtypeStruct((B, 1, 1), f32),
        in_specs=[
            graph_spec(n, n),                 # adj
            graph_spec(n, c0 * n),            # gp0
            graph_spec(n, c0 * n),            # gpt0
            graph_spec(c0 * n, c0 * n),       # bd0
            graph_spec(n, h * n),             # mask
            graph_spec(n, h * n),             # maskT
            shared_spec(c0 * n, h * n),       # we1r
            shared_spec(c0 * n, h * n),       # we1s
            shared_spec(h * n, h * n),        # we2r
            shared_spec(h * n, h * n),        # we2s
            shared_spec(1, h * n),            # b1 (lane-replicated)
            shared_spec(1, h * n),            # b2 (lane-replicated)
            shared_spec(1, c0 * n),           # fcw level 0 (lane-replicated)
            shared_spec(1, h * n),            # fcw level 1
            shared_spec(1, h * n),            # fcw level 2
            shared_spec(1, 1),                # fcb
        ],
        out_specs=pl.BlockSpec((1, 1, 1), lambda g: (g, 0, 0)),
        compiler_params=pltpu.CompilerParams(
            dimension_semantics=("parallel",)),
    )(adj, gp0, gpt0, bd0, mask, maskT,
      we1r, we1s, we2r, we2s, b1l, b2l, fcw0, fcw1, fcw2, fcb2d)
    return out.reshape(B, 1)


ccn_1d_forward_batched = jax.jit(_forward_batched)


def ccn_1d_forward(X, adj, w1, b1, w2, b2, fcw, fcb):
    """Single-graph forward matching torch CCN_1D.forward; returns shape (1,)."""
    out = ccn_1d_forward_batched(X[None], adj[None], w1, b1, w2, b2, fcw, fcb)
    return out.reshape(1)


def ref_forward_numpy(X, adj, w1, b1, w2, b2, fcw, fcb):
    """Ragged numpy reference mirroring the PyTorch CCN_1D forward exactly."""
    n = adj.shape[0]
    nbrs = [np.nonzero(adj[i] > 0)[0] for i in range(n)]
    F = [np.tile(X[j][None, :], (len(nbrs[j]), 1)).astype(np.float32) for j in range(n)]
    levels = [F]
    for (W, b) in ((w1, b1), (w2, b2)):
        Fnew = []
        for i in range(n):
            il = nbrs[i]
            proms = []
            for j in il:
                jl = nbrs[j]
                chi = (il[:, None] == jl[None, :]).astype(np.float32)
                proms.append(chi @ F[j])
            T = np.stack(proms, 0)                       # (deg_i, deg_i, C)
            collapsed = np.concatenate([T.sum(0), T.sum(1)], axis=1)
            Fnew.append(np.maximum(collapsed @ W.T + b, 0.0))
        F = Fnew
        levels.append(F)
    summed = [sum(v.sum(0) for v in f) for f in levels]
    graph_feat = np.concatenate(summed, 0)
    return graph_feat @ fcw.T + fcb                      # shape (1,)


if __name__ == "__main__":
    B, n, input_feats, hidden = 4, 8, 4, 2

    key = jax.random.PRNGKey(0)
    k_adj, kx, k1, k2, k3, k4, k5, k6 = jax.random.split(key, 8)

    # Deterministic batch of small graphs: ring backbone + random chords,
    # symmetric, zero diagonal (every vertex has degree >= 2).
    ring = np.zeros((n, n), np.float32)
    for i in range(n):
        ring[i, (i + 1) % n] = 1.0
        ring[(i + 1) % n, i] = 1.0
    chords = np.asarray(jax.random.bernoulli(k_adj, 0.25, (B, n, n)),
                        dtype=np.float32)
    adj_np = np.maximum(chords, np.transpose(chords, (0, 2, 1)))
    adj_np = np.maximum(adj_np, ring[None, :, :])
    for g in range(B):
        np.fill_diagonal(adj_np[g], 0.0)

    scale = 0.01
    X = jax.random.normal(kx, (B, n, input_feats), dtype=jnp.float32)
    w1 = scale * jax.random.normal(k1, (hidden, 2 * input_feats), dtype=jnp.float32)
    b1 = scale * jax.random.normal(k2, (hidden,), dtype=jnp.float32)
    w2 = scale * jax.random.normal(k3, (hidden, 2 * hidden), dtype=jnp.float32)
    b2 = scale * jax.random.normal(k4, (hidden,), dtype=jnp.float32)
    fcw = scale * jax.random.normal(k5, (1, 2 * hidden + input_feats), dtype=jnp.float32)
    fcb = scale * jax.random.normal(k6, (1,), dtype=jnp.float32)

    adj = jnp.asarray(adj_np)

    out = ccn_1d_forward_batched(X, adj, w1, b1, w2, b2, fcw, fcb)
    out = jax.block_until_ready(out)

    ref = np.stack([
        ref_forward_numpy(np.asarray(X[g]), adj_np[g], np.asarray(w1),
                          np.asarray(b1), np.asarray(w2), np.asarray(b2),
                          np.asarray(fcw), np.asarray(fcb))
        for g in range(B)
    ])                                                   # (B, 1)
    np.testing.assert_allclose(np.asarray(out), ref, rtol=1e-4, atol=1e-5)

    single = ccn_1d_forward(X[0], adj[0], w1, b1, w2, b2, fcw, fcb)
    single = jax.block_until_ready(single)
    np.testing.assert_allclose(np.asarray(single), ref[0], rtol=1e-4, atol=1e-5)

    print("KERNEL_OK")
</pallas_src>

<mosaic_0001>
module attributes {stable_mosaic.version = 11 : i64} {
  func.func @ccn1d_kernel(%arg0: i32, %arg1: memref<1x8x8xf32, #tpu.memory_space<vmem>>, %arg2: memref<1x8x32xf32, #tpu.memory_space<vmem>>, %arg3: memref<1x8x32xf32, #tpu.memory_space<vmem>>, %arg4: memref<1x32x32xf32, #tpu.memory_space<vmem>>, %arg5: memref<1x8x16xf32, #tpu.memory_space<vmem>>, %arg6: memref<1x8x16xf32, #tpu.memory_space<vmem>>, %arg7: memref<32x16xf32, #tpu.memory_space<vmem>>, %arg8: memref<32x16xf32, #tpu.memory_space<vmem>>, %arg9: memref<16x16xf32, #tpu.memory_space<vmem>>, %arg10: memref<16x16xf32, #tpu.memory_space<vmem>>, %arg11: memref<1x16xf32, #tpu.memory_space<vmem>>, %arg12: memref<1x16xf32, #tpu.memory_space<vmem>>, %arg13: memref<1x32xf32, #tpu.memory_space<vmem>>, %arg14: memref<1x16xf32, #tpu.memory_space<vmem>>, %arg15: memref<1x16xf32, #tpu.memory_space<vmem>>, %arg16: memref<1x1xf32, #tpu.memory_space<vmem>>, %arg17: memref<1x1x1xf32, #tpu.memory_space<vmem>>) attributes {dimension_semantics = [#tpu.dimension_semantics<parallel>], iteration_bounds = array<i64: 4>, scalar_prefetch = 0 : i64, scratch_operands = 0 : i64, tpu.core_type = #tpu.core_type<tc>, window_params = [{transform_indices = @transform_0, window_bounds = array<i64: 1, 8, 8>}, {transform_indices = @transform_1, window_bounds = array<i64: 1, 8, 32>}, {transform_indices = @transform_2, window_bounds = array<i64: 1, 8, 32>}, {transform_indices = @transform_3, window_bounds = array<i64: 1, 32, 32>}, {transform_indices = @transform_4, window_bounds = array<i64: 1, 8, 16>}, {transform_indices = @transform_5, window_bounds = array<i64: 1, 8, 16>}, {pipeline_mode = #tpu.pipeline_mode<synchronous>, transform_indices = @transform_6, window_bounds = array<i64: 32, 16>}, {pipeline_mode = #tpu.pipeline_mode<synchronous>, transform_indices = @transform_7, window_bounds = array<i64: 32, 16>}, {pipeline_mode = #tpu.pipeline_mode<synchronous>, transform_indices = @transform_8, window_bounds = array<i64: 16, 16>}, {pipeline_mode = #tpu.pipeline_mode<synchronous>, transform_indices = @transform_9, window_bounds = array<i64: 16, 16>}, {pipeline_mode = #tpu.pipeline_mode<synchronous>, transform_indices = @transform_10, window_bounds = array<i64: 1, 16>}, {pipeline_mode = #tpu.pipeline_mode<synchronous>, transform_indices = @transform_11, window_bounds = array<i64: 1, 16>}, {pipeline_mode = #tpu.pipeline_mode<synchronous>, transform_indices = @transform_12, window_bounds = array<i64: 1, 32>}, {pipeline_mode = #tpu.pipeline_mode<synchronous>, transform_indices = @transform_13, window_bounds = array<i64: 1, 16>}, {pipeline_mode = #tpu.pipeline_mode<synchronous>, transform_indices = @transform_14, window_bounds = array<i64: 1, 16>}, {pipeline_mode = #tpu.pipeline_mode<synchronous>, transform_indices = @transform_15, window_bounds = array<i64: 1, 1>}, {transform_indices = @transform_16, window_bounds = array<i64: 1, 1, 1>}]} {
    %c0 = arith.constant 0 : index
    %c0_0 = arith.constant 0 : index
    %c0_1 = arith.constant 0 : index
    %0 = vector.load %arg1[%c0, %c0_0, %c0_1] : memref<1x8x8xf32, #tpu.memory_space<vmem>>, vector<1x8x8xf32>
    %1 = vector.shape_cast %0 : vector<1x8x8xf32> to vector<8x8xf32>
    %c0_2 = arith.constant 0 : index
    %c0_3 = arith.constant 0 : index
    %c0_4 = arith.constant 0 : index
    %2 = vector.load %arg2[%c0_2, %c0_3, %c0_4] : memref<1x8x32xf32, #tpu.memory_space<vmem>>, vector<1x8x32xf32>
    %3 = vector.shape_cast %2 : vector<1x8x32xf32> to vector<8x32xf32>
    %c0_5 = arith.constant 0 : index
    %c0_6 = arith.constant 0 : index
    %c0_7 = arith.constant 0 : index
    %4 = vector.load %arg3[%c0_5, %c0_6, %c0_7] : memref<1x8x32xf32, #tpu.memory_space<vmem>>, vector<1x8x32xf32>
    %5 = vector.shape_cast %4 : vector<1x8x32xf32> to vector<8x32xf32>
    %c0_8 = arith.constant 0 : index
    %c0_9 = arith.constant 0 : index
    %c0_10 = arith.constant 0 : index
    %6 = vector.load %arg4[%c0_8, %c0_9, %c0_10] : memref<1x32x32xf32, #tpu.memory_space<vmem>>, vector<1x32x32xf32>
    %7 = vector.shape_cast %6 : vector<1x32x32xf32> to vector<32x32xf32>
    %c0_11 = arith.constant 0 : index
    %c0_12 = arith.constant 0 : index
    %c0_13 = arith.constant 0 : index
    %8 = vector.load %arg5[%c0_11, %c0_12, %c0_13] : memref<1x8x16xf32, #tpu.memory_space<vmem>>, vector<1x8x16xf32>
    %9 = vector.shape_cast %8 : vector<1x8x16xf32> to vector<8x16xf32>
    %c0_14 = arith.constant 0 : index
    %c0_15 = arith.constant 0 : index
    %c0_16 = arith.constant 0 : index
    %10 = vector.load %arg6[%c0_14, %c0_15, %c0_16] : memref<1x8x16xf32, #tpu.memory_space<vmem>>, vector<1x8x16xf32>
    %11 = vector.shape_cast %10 : vector<1x8x16xf32> to vector<8x16xf32>
    %c0_17 = arith.constant 0 : index
    %c0_18 = arith.constant 0 : index
    %12 = vector.load %arg11[%c0_17, %c0_18] : memref<1x16xf32, #tpu.memory_space<vmem>>, vector<1x16xf32>
    %c0_19 = arith.constant 0 : index
    %c0_20 = arith.constant 0 : index
    %13 = vector.load %arg12[%c0_19, %c0_20] : memref<1x16xf32, #tpu.memory_space<vmem>>, vector<1x16xf32>
    %c0_21 = arith.constant 0 : index
    %c0_22 = arith.constant 0 : index
    %14 = vector.load %arg7[%c0_21, %c0_22] : memref<32x16xf32, #tpu.memory_space<vmem>>, vector<32x16xf32>
    %cst = arith.constant dense<0.000000e+00> : vector<8x16xf32>
    %15 = tpu.matmul %3, %14, %cst {dimension_numbers = #tpu.dot_dimension_numbers<[1], [0], [0], [1], [0, 0, 1, 1], [], []>} : vector<8x32xf32>, vector<32x16xf32>, vector<8x16xf32> -> vector<8x16xf32>
    %c0_23 = arith.constant 0 : index
    %c0_24 = arith.constant 0 : index
    %16 = vector.load %arg8[%c0_23, %c0_24] : memref<32x16xf32, #tpu.memory_space<vmem>>, vector<32x16xf32>
    %cst_25 = arith.constant dense<0.000000e+00> : vector<8x16xf32>
    %17 = tpu.matmul %5, %16, %cst_25 {dimension_numbers = #tpu.dot_dimension_numbers<[1], [0], [0], [1], [0, 0, 1, 1], [], []>} : vector<8x32xf32>, vector<32x16xf32>, vector<8x16xf32> -> vector<8x16xf32>
    %18 = arith.addf %15, %17 : vector<8x16xf32>
    %cst_26 = arith.constant dense<0.000000e+00> : vector<8x16xf32>
    %19 = tpu.matmul %1, %18, %cst_26 {dimension_numbers = #tpu.dot_dimension_numbers<[1], [0], [0], [1], [0, 0, 1, 1], [], []>} : vector<8x8xf32>, vector<8x16xf32>, vector<8x16xf32> -> vector<8x16xf32>
    %20 = vector.broadcast %12 : vector<1x16xf32> to vector<8x16xf32>
    %21 = arith.addf %19, %20 : vector<8x16xf32>
    %cst_27 = arith.constant 0.000000e+00 : f32
    %22 = vector.broadcast %cst_27 : f32 to vector<8x16xf32>
    %23 = arith.maximumf %21, %22 : vector<8x16xf32>
    %24 = arith.mulf %23, %9 : vector<8x16xf32>
    %cst_28 = arith.constant dense<0.000000e+00> : vector<8x32xf32>
    %25 = tpu.matmul %5, %7, %cst_28 {dimension_numbers = #tpu.dot_dimension_numbers<[1], [0], [0], [1], [0, 0, 1, 1], [], []>} : vector<8x32xf32>, vector<32x32xf32>, vector<8x32xf32> -> vector<8x32xf32>
    %cst_29 = arith.constant dense<0.000000e+00> : vector<8x32xf32>
    %26 = tpu.matmul %3, %7, %cst_29 {dimension_numbers = #tpu.dot_dimension_numbers<[1], [0], [0], [1], [0, 0, 1, 1], [], []>} : vector<8x32xf32>, vector<32x32xf32>, vector<8x32xf32> -> vector<8x32xf32>
    %c0_30 = arith.constant 0 : index
    %c0_31 = arith.constant 0 : index
    %27 = vector.load %arg7[%c0_30, %c0_31] : memref<32x16xf32, #tpu.memory_space<vmem>>, vector<32x16xf32>
    %cst_32 = arith.constant dense<0.000000e+00> : vector<8x16xf32>
    %28 = tpu.matmul %25, %27, %cst_32 {dimension_numbers = #tpu.dot_dimension_numbers<[1], [0], [0], [1], [0, 0, 1, 1], [], []>} : vector<8x32xf32>, vector<32x16xf32>, vector<8x16xf32> -> vector<8x16xf32>
    %c0_33 = arith.constant 0 : index
    %c0_34 = arith.constant 0 : index
    %29 = vector.load %arg8[%c0_33, %c0_34] : memref<32x16xf32, #tpu.memory_space<vmem>>, vector<32x16xf32>
    %cst_35 = arith.constant dense<0.000000e+00> : vector<8x16xf32>
    %30 = tpu.matmul %26, %29, %cst_35 {dimension_numbers = #tpu.dot_dimension_numbers<[1], [0], [0], [1], [0, 0, 1, 1], [], []>} : vector<8x32xf32>, vector<32x16xf32>, vector<8x16xf32> -> vector<8x16xf32>
    %31 = arith.addf %28, %30 : vector<8x16xf32>
    %32 = vector.broadcast %12 : vector<1x16xf32> to vector<8x16xf32>
    %33 = arith.addf %31, %32 : vector<8x16xf32>
    %cst_36 = arith.constant 0.000000e+00 : f32
    %34 = vector.broadcast %cst_36 : f32 to vector<8x16xf32>
    %35 = arith.maximumf %33, %34 : vector<8x16xf32>
    %36 = arith.mulf %35, %11 : vector<8x16xf32>
    %c0_37 = arith.constant 0 : index
    %c0_38 = arith.constant 0 : index
    %37 = vector.load %arg9[%c0_37, %c0_38] : memref<16x16xf32, #tpu.memory_space<vmem>>, vector<16x16xf32>
    %cst_39 = arith.constant dense<0.000000e+00> : vector<8x16xf32>
    %38 = tpu.matmul %24, %37, %cst_39 {dimension_numbers = #tpu.dot_dimension_numbers<[1], [0], [0], [1], [0, 0, 1, 1], [], []>} : vector<8x16xf32>, vector<16x16xf32>, vector<8x16xf32> -> vector<8x16xf32>
    %c0_40 = arith.constant 0 : index
    %c0_41 = arith.constant 0 : index
    %39 = vector.load %arg10[%c0_40, %c0_41] : memref<16x16xf32, #tpu.memory_space<vmem>>, vector<16x16xf32>
    %cst_42 = arith.constant dense<0.000000e+00> : vector<8x16xf32>
    %40 = tpu.matmul %36, %39, %cst_42 {dimension_numbers = #tpu.dot_dimension_numbers<[1], [0], [0], [1], [0, 0, 1, 1], [], []>} : vector<8x16xf32>, vector<16x16xf32>, vector<8x16xf32> -> vector<8x16xf32>
    %41 = arith.addf %38, %40 : vector<8x16xf32>
    %cst_43 = arith.constant dense<0.000000e+00> : vector<8x16xf32>
    %42 = tpu.matmul %1, %41, %cst_43 {dimension_numbers = #tpu.dot_dimension_numbers<[1], [0], [0], [1], [0, 0, 1, 1], [], []>} : vector<8x8xf32>, vector<8x16xf32>, vector<8x16xf32> -> vector<8x16xf32>
    %43 = vector.broadcast %13 : vector<1x16xf32> to vector<8x16xf32>
    %44 = arith.addf %42, %43 : vector<8x16xf32>
    %cst_44 = arith.constant 0.000000e+00 : f32
    %45 = vector.broadcast %cst_44 : f32 to vector<8x16xf32>
    %46 = arith.maximumf %44, %45 : vector<8x16xf32>
    %47 = arith.mulf %46, %9 : vector<8x16xf32>
    %c0_45 = arith.constant 0 : index
    %c0_46 = arith.constant 0 : index
    %48 = vector.load %arg13[%c0_45, %c0_46] : memref<1x32xf32, #tpu.memory_space<vmem>>, vector<1x32xf32>
    %49 = vector.broadcast %48 : vector<1x32xf32> to vector<8x32xf32>
    %50 = arith.mulf %3, %49 : vector<8x32xf32>
    %cst_47 = arith.constant dense<0.000000e+00> : vector<8xf32>
    %51 = vector.multi_reduction <add>, %50, %cst_47 [1] : vector<8x32xf32> to vector<8xf32>
    %52 = vector.shape_cast %51 : vector<8xf32> to vector<8x1xf32>
    %c0_48 = arith.constant 0 : index
    %c0_49 = arith.constant 0 : index
    %53 = vector.load %arg14[%c0_48, %c0_49] : memref<1x16xf32, #tpu.memory_space<vmem>>, vector<1x16xf32>
    %54 = vector.broadcast %53 : vector<1x16xf32> to vector<8x16xf32>
    %55 = arith.mulf %24, %54 : vector<8x16xf32>
    %cst_50 = arith.constant dense<0.000000e+00> : vector<8xf32>
    %56 = vector.multi_reduction <add>, %55, %cst_50 [1] : vector<8x16xf32> to vector<8xf32>
    %57 = vector.shape_cast %56 : vector<8xf32> to vector<8x1xf32>
    %58 = arith.addf %52, %57 : vector<8x1xf32>
    %c0_51 = arith.constant 0 : index
    %c0_52 = arith.constant 0 : index
    %59 = vector.load %arg15[%c0_51, %c0_52] : memref<1x16xf32, #tpu.memory_space<vmem>>, vector<1x16xf32>
    %60 = vector.broadcast %59 : vector<1x16xf32> to vector<8x16xf32>
    %61 = arith.mulf %47, %60 : vector<8x16xf32>
    %cst_53 = arith.constant dense<0.000000e+00> : vector<8xf32>
    %62 = vector.multi_reduction <add>, %61, %cst_53 [1] : vector<8x16xf32> to vector<8xf32>
    %63 = vector.shape_cast %62 : vector<8xf32> to vector<8x1xf32>
    %64 = arith.addf %58, %63 : vector<8x1xf32>
    %cst_54 = arith.constant dense<0.000000e+00> : vector<1xf32>
    %65 = vector.multi_reduction <add>, %64, %cst_54 [0] : vector<8x1xf32> to vector<1xf32>
    %66 = vector.shape_cast %65 : vector<1xf32> to vector<1x1xf32>
    %c0_55 = arith.constant 0 : index
    %c0_56 = arith.constant 0 : index
    %67 = vector.load %arg16[%c0_55, %c0_56] : memref<1x1xf32, #tpu.memory_space<vmem>>, vector<1x1xf32>
    %68 = arith.addf %66, %67 : vector<1x1xf32>
    %c0_57 = arith.constant 0 : index
    %c0_58 = arith.constant 0 : index
    %c0_59 = arith.constant 0 : index
    %69 = vector.load %arg17[%c0_57, %c0_58, %c0_59] : memref<1x1x1xf32, #tpu.memory_space<vmem>>, vector<1x1x1xf32>
    %70 = vector.shape_cast %69 : vector<1x1x1xf32> to vector<1x1xf32>
    %71 = vector.shape_cast %68 : vector<1x1xf32> to vector<1x1x1xf32>
    tpu.vector_store %arg17[%c0_57, %c0_58, %c0_59], %71 {strides = array<i32>} : memref<1x1x1xf32, #tpu.memory_space<vmem>>, vector<1x1x1xf32>,
    return
  }
  func.func @transform_0(%arg0: i32) -> (i32, i32, i32) {
    %c0_i32 = arith.constant 0 : i32
    %c0_i32_0 = arith.constant 0 : i32
    %c0_i32_1 = arith.constant 0 : i32
    return %arg0, %c0_i32, %c0_i32_0 : i32, i32, i32
  }
  func.func @transform_1(%arg0: i32) -> (i32, i32, i32) {
    %c0_i32 = arith.constant 0 : i32
    %c0_i32_0 = arith.constant 0 : i32
    %c0_i32_1 = arith.constant 0 : i32
    return %arg0, %c0_i32, %c0_i32_0 : i32, i32, i32
  }
  func.func @transform_2(%arg0: i32) -> (i32, i32, i32) {
    %c0_i32 = arith.constant 0 : i32
    %c0_i32_0 = arith.constant 0 : i32
    %c0_i32_1 = arith.constant 0 : i32
    return %arg0, %c0_i32, %c0_i32_0 : i32, i32, i32
  }
  func.func @transform_3(%arg0: i32) -> (i32, i32, i32) {
    %c0_i32 = arith.constant 0 : i32
    %c0_i32_0 = arith.constant 0 : i32
    %c0_i32_1 = arith.constant 0 : i32
    return %arg0, %c0_i32, %c0_i32_0 : i32, i32, i32
  }
  func.func @transform_4(%arg0: i32) -> (i32, i32, i32) {
    %c0_i32 = arith.constant 0 : i32
    %c0_i32_0 = arith.constant 0 : i32
    %c0_i32_1 = arith.constant 0 : i32
    return %arg0, %c0_i32, %c0_i32_0 : i32, i32, i32
  }
  func.func @transform_5(%arg0: i32) -> (i32, i32, i32) {
    %c0_i32 = arith.constant 0 : i32
    %c0_i32_0 = arith.constant 0 : i32
    %c0_i32_1 = arith.constant 0 : i32
    return %arg0, %c0_i32, %c0_i32_0 : i32, i32, i32
  }
  func.func @transform_6(%arg0: i32) -> (i32, i32) {
    %c0_i32 = arith.constant 0 : i32
    %c0_i32_0 = arith.constant 0 : i32
    %c0_i32_1 = arith.constant 0 : i32
    return %c0_i32, %c0_i32_0 : i32, i32
  }
  func.func @transform_7(%arg0: i32) -> (i32, i32) {
    %c0_i32 = arith.constant 0 : i32
    %c0_i32_0 = arith.constant 0 : i32
    %c0_i32_1 = arith.constant 0 : i32
    return %c0_i32, %c0_i32_0 : i32, i32
  }
  func.func @transform_8(%arg0: i32) -> (i32, i32) {
    %c0_i32 = arith.constant 0 : i32
    %c0_i32_0 = arith.constant 0 : i32
    %c0_i32_1 = arith.constant 0 : i32
    return %c0_i32, %c0_i32_0 : i32, i32
  }
  func.func @transform_9(%arg0: i32) -> (i32, i32) {
    %c0_i32 = arith.constant 0 : i32
    %c0_i32_0 = arith.constant 0 : i32
    %c0_i32_1 = arith.constant 0 : i32
    return %c0_i32, %c0_i32_0 : i32, i32
  }
  func.func @transform_10(%arg0: i32) -> (i32, i32) {
    %c0_i32 = arith.constant 0 : i32
    %c0_i32_0 = arith.constant 0 : i32
    %c0_i32_1 = arith.constant 0 : i32
    return %c0_i32, %c0_i32_0 : i32, i32
  }
  func.func @transform_11(%arg0: i32) -> (i32, i32) {
    %c0_i32 = arith.constant 0 : i32
    %c0_i32_0 = arith.constant 0 : i32
    %c0_i32_1 = arith.constant 0 : i32
    return %c0_i32, %c0_i32_0 : i32, i32
  }
  func.func @transform_12(%arg0: i32) -> (i32, i32) {
    %c0_i32 = arith.constant 0 : i32
    %c0_i32_0 = arith.constant 0 : i32
    %c0_i32_1 = arith.constant 0 : i32
    return %c0_i32, %c0_i32_0 : i32, i32
  }
  func.func @transform_13(%arg0: i32) -> (i32, i32) {
    %c0_i32 = arith.constant 0 : i32
    %c0_i32_0 = arith.constant 0 : i32
    %c0_i32_1 = arith.constant 0 : i32
    return %c0_i32, %c0_i32_0 : i32, i32
  }
  func.func @transform_14(%arg0: i32) -> (i32, i32) {
    %c0_i32 = arith.constant 0 : i32
    %c0_i32_0 = arith.constant 0 : i32
    %c0_i32_1 = arith.constant 0 : i32
    return %c0_i32, %c0_i32_0 : i32, i32
  }
  func.func @transform_15(%arg0: i32) -> (i32, i32) {
    %c0_i32 = arith.constant 0 : i32
    %c0_i32_0 = arith.constant 0 : i32
    %c0_i32_1 = arith.constant 0 : i32
    return %c0_i32, %c0_i32_0 : i32, i32
  }
  func.func @transform_16(%arg0: i32) -> (i32, i32, i32) {
    %c0_i32 = arith.constant 0 : i32
    %c0_i32_0 = arith.constant 0 : i32
    %c0_i32_1 = arith.constant 0 : i32
    return %arg0, %c0_i32, %c0_i32_0 : i32, i32, i32
  }
}

</mosaic_0001>

<bundles_post_ra>
// kernel: tile.14
= control target key start
LH: loop header
LB: loop body
LE: loop exit
PB: predicated region body
PF: predicated region fallthrough
CT: control target
= control target key end

     0   :  { %vm132_vm0 = vcmask 1047556   ;;  %s244_s15 = smov 8   ;;  %vm134_vm1 = vcmask 64512   ;;  %vm171_vm2 = vcmask 130112   ;;  %s387_s0 = inlined_call_operand.vmem [shape: f32[4,8,2,8], index: 0, kind: input, shape index: {}]   ;;  %s388_s1 = inlined_call_operand.vmem [shape: f32[4,8,16], index: 1, kind: output, shape index: {}]  }
   0x1   :  { %v230_v0 = vld [vmem:[%s387_s0 + $0xe] sm:$0x3]  ;;  %v231_v1 = vld [vmem:[%s387_s0 + $0xc] sm:$0x3]  ;;  %v232_v2 = vld [vmem:[%s387_s0 + $0xa] sm:$0x3] }
   0x2   :  { %103 = vst [vmem:[#allocation0 + $0x38] sm:$0x3] %v230_v0  ;;  %v233_v3 = vld [vmem:[%s387_s0 + $0x8] sm:$0x3]  ;;  %v234_v4 = vld [vmem:[%s387_s0 + $0x6] sm:$0x3] }
   0x3   :  { %107 = vst [vmem:[#allocation0 + $0x30] sm:$0x3] %v231_v1  ;;  %v235_v5 = vld [vmem:[%s387_s0 + $0x4] sm:$0x3]  ;;  %v236_v6 = vld [vmem:[%s387_s0 + $0x2] sm:$0x3] }
   0x4   :  { %111 = vst [vmem:[#allocation0 + $0x28] sm:$0x3] %v232_v2  ;;  %v128_v7 = vld [vmem:[%s387_s0] sm:$0x3]  ;;  %v214_v8 = vld [vmem:[%s387_s0 + $0x2e] sm:$0x3] }
   0x5   :  { %115 = vst [vmem:[#allocation0 + $0x20] sm:$0x3] %v233_v3  ;;  %v215_v9 = vld [vmem:[%s387_s0 + $0x2c] sm:$0x3]  ;;  %v216_v10 = vld [vmem:[%s387_s0 + $0x2a] sm:$0x3] }
   0x6   :  { %119 = vst [vmem:[#allocation0 + $0x18] sm:$0x3] %v234_v4  ;;  %v217_v11 = vld [vmem:[%s387_s0 + $0x28] sm:$0x3]  ;;  %v218_v12 = vld [vmem:[%s387_s0 + $0x26] sm:$0x3] }
   0x7   :  { %123 = vst [vmem:[#allocation0 + $0x10] sm:$0x3] %v235_v5  ;;  %v219_v13 = vld [vmem:[%s387_s0 + $0x24] sm:$0x3]  ;;  %v220_v14 = vld [vmem:[%s387_s0 + $0x22] sm:$0x3] }
   0x8   :  { %127 = vst [vmem:[#allocation0 + $0x8] sm:$0x3] %v236_v6  ;;  %v221_v15 = vld [vmem:[%s387_s0 + $0x20] sm:$0x3]  ;;  %v222_v17 = vld [vmem:[%s387_s0 + $0x1e] sm:$0x3] }
   0x9   :  { %129 = vst [vmem:[#allocation0] sm:$0x3] %v128_v7  ;;  %v223_v18 = vld [vmem:[%s387_s0 + $0x1c] sm:$0x3]  ;;  %v224_v21 = vld [vmem:[%s387_s0 + $0x1a] sm:$0x3] }
   0xa   :  { %39 = vst [vmem:[#allocation0 + $0xb8] sm:$0x3] %v214_v8  ;;  %v225_v22 = vld [vmem:[%s387_s0 + $0x18] sm:$0x3]  ;;  %v226_v23 = vld [vmem:[%s387_s0 + $0x16] sm:$0x3] }
   0xb   :  { %43 = vst [vmem:[#allocation0 + $0xb0] sm:$0x3] %v215_v9  ;;  %v227_v24 = vld [vmem:[%s387_s0 + $0x14] sm:$0x3]  ;;  %v228_v25 = vld [vmem:[%s387_s0 + $0x12] sm:$0x3] }
   0xc   :  { %47 = vst [vmem:[#allocation0 + $0xa8] sm:$0x3] %v216_v10  ;;  %v166_v16 = vld [vmem:[#allocation0 + $0x1] ss:$8 sm:$0xf0]  }
   0xd   :  { %51 = vst [vmem:[#allocation0 + $0xa0] sm:$0x3] %v217_v11  ;;  %v229_v26 = vld [vmem:[%s387_s0 + $0x10] sm:$0x3]  ;;  %v206_v28 = vld [vmem:[%s387_s0 + $0x3e] sm:$0x3] }
   0xe   :  { %55 = vst [vmem:[#allocation0 + $0x98] sm:$0x3] %v218_v12  ;;  %v207_v29 = vld [vmem:[%s387_s0 + $0x3c] sm:$0x3]  ;;  %v208_v32 = vld [vmem:[%s387_s0 + $0x3a] sm:$0x3] }
   0xf   :  { %59 = vst [vmem:[#allocation0 + $0x90] sm:$0x3] %v219_v13  ;;  %v209_v33 = vld [vmem:[%s387_s0 + $0x38] sm:$0x3]  ;;  %v210_v34 = vld [vmem:[%s387_s0 + $0x36] sm:$0x3] }
  0x10   :  { %v164_v19 = vld [vmem:[#allocation0 + $0x1] ss:$8 sm:$0xf]   ;;  %63 = vst [vmem:[#allocation0 + $0x88] sm:$0x3] %v220_v14 }
  0x11   :  { %v168_v20 = vsel %vm132_vm0, %v166_v16, %v164_v19  ;;  %67 = vst [vmem:[#allocation0 + $0x80] sm:$0x3] %v221_v15  ;;  %v211_v35 = vld [vmem:[%s387_s0 + $0x34] sm:$0x3]  ;;  %v212_v36 = vld [vmem:[%s387_s0 + $0x32] sm:$0x3] }
  0x12   :  { %169 = vrot.lane.b32.xlu0 %v168_v20, %s244_s15  ;;  %71 = vst [vmem:[#allocation0 + $0x78] sm:$0x3] %v222_v17  ;;  %v213_v37 = vld [vmem:[%s387_s0 + $0x30] sm:$0x3] }
  0x13   :  { %75 = vst [vmem:[#allocation0 + $0x70] sm:$0x3] %v223_v18  ;;  %v130_v44 = vld [vmem:[#allocation0] ss:$8 sm:$0xf]  }
  0x14   :  { %79 = vst [vmem:[#allocation0 + $0x68] sm:$0x3] %v224_v21  ;;  %v187_v27 = vld [vmem:[#allocation0 + $0x81] ss:$8 sm:$0xf0]  }
  0x15   :  { %83 = vst [vmem:[#allocation0 + $0x60] sm:$0x3] %v225_v22  ;;  %v131_v45 = vld [vmem:[#allocation0] ss:$8 sm:$0xf0]  }
  0x16   :  { %87 = vst [vmem:[#allocation0 + $0x58] sm:$0x3] %v226_v23  ;;  %v133_v46 = vsel %vm132_vm0, %v131_v45, %v130_v44  ;;  %v148_v48 = vld [vmem:[#allocation0 + $0x80] ss:$8 sm:$0xf0]  }
  0x17   :  { %91 = vst [vmem:[#allocation0 + $0x50] sm:$0x3] %v227_v24 }
  0x18   :  { %v185_v30 = vld [vmem:[#allocation0 + $0x81] ss:$8 sm:$0xf]   ;;  %95 = vst [vmem:[#allocation0 + $0x48] sm:$0x3] %v228_v25 }
  0x19   :  { %v189_v31 = vsel %vm132_vm0, %v187_v27, %v185_v30  ;;  %99 = vst [vmem:[#allocation0 + $0x40] sm:$0x3] %v229_v26  ;;  %v146_v47 = vld [vmem:[#allocation0 + $0x80] ss:$8 sm:$0xf]  }
  0x1a   :  { %190 = vrot.lane.b32.xlu1 %v189_v31, %s244_s15  ;;  %7 = vst [vmem:[#allocation0 + $0xf8] sm:$0x3] %v206_v28  ;;  %v150_v49 = vsel %vm132_vm0, %v148_v48, %v146_v47 }
  0x1b   :  { %11 = vst [vmem:[#allocation0 + $0xf0] sm:$0x3] %v207_v29 }
  0x1c   :  { %15 = vst [vmem:[#allocation0 + $0xe8] sm:$0x3] %v208_v32  ;;  %v176_v38 = vld [vmem:[#allocation0 + $0x41] ss:$8 sm:$0xf0]  }
  0x1d   :  { %19 = vst [vmem:[#allocation0 + $0xe0] sm:$0x3] %v209_v33  ;;  %v139_v51 = vld [vmem:[#allocation0 + $0x40] ss:$8 sm:$0xf0]  }
  0x1e   :  { %23 = vst [vmem:[#allocation0 + $0xd8] sm:$0x3] %v210_v34 }
  0x1f   :  { %27 = vst [vmem:[#allocation0 + $0xd0] sm:$0x3] %v211_v35 }
  0x20   :  { %v174_v39 = vld [vmem:[#allocation0 + $0x41] ss:$8 sm:$0xf]   ;;  %31 = vst [vmem:[#allocation0 + $0xc8] sm:$0x3] %v212_v36 }
  0x21   :  { %v178_v40 = vsel %vm132_vm0, %v176_v38, %v174_v39  ;;  %35 = vst [vmem:[#allocation0 + $0xc0] sm:$0x3] %v213_v37  ;;  %v137_v50 = vld [vmem:[#allocation0 + $0x40] ss:$8 sm:$0xf]  }
  0x22   :  { %179 = vrot.lane.b32.xlu0 %v178_v40, %s244_s15  ;;  %135 = vst.msk [vmem:[%s388_s1] sm:$0xff] %vm134_vm1, %v133_v46   ;;  %v141_v52 = vsel %vm132_vm0, %v139_v51, %v137_v50 }
  0x23   :  { %238 = vst.msk [vmem:[%s388_s1 + $0x10] sm:$0xff] %vm134_vm1, %v150_v49  }
  0x24   :  { %v198_v41 = vld [vmem:[#allocation0 + $0xc1] ss:$8 sm:$0xf0]   ;;  %237 = vst.msk [vmem:[%s388_s1 + $0x8] sm:$0xff] %vm134_vm1, %v141_v52  }
  0x25   :  { %v157_v54 = vld [vmem:[#allocation0 + $0xc0] ss:$8 sm:$0xf0]  }
  0x28   :  { %v196_v42 = vld [vmem:[#allocation0 + $0xc1] ss:$8 sm:$0xf]   ;;  %v155_v53 = vld [vmem:[#allocation0 + $0xc0] ss:$8 sm:$0xf]  }
  0x29   :  { %v200_v43 = vsel %vm132_vm0, %v198_v41, %v196_v42  ;;  %v159_v55 = vsel %vm132_vm0, %v157_v54, %v155_v53 }
  0x2a   :  { %201 = vrot.lane.b32.xlu1 %v200_v43, %s244_s15  ;;  %239 = vst.msk [vmem:[%s388_s1 + $0x18] sm:$0xff] %vm134_vm1, %v159_v55  }
  0x84   :  { %v170_v56 = vpop.permute.xlu0 %169  }
  0x85   :  { %172 = vst.msk [vmem:[%s388_s1] sm:$0xff] %vm171_vm2, %v170_v56  }
  0x8c   :  { %v191_v57 = vpop.permute.xlu1 %190  }
  0x8d   :  { %241 = vst.msk [vmem:[%s388_s1 + $0x10] sm:$0xff] %vm171_vm2, %v191_v57  }
  0x94   :  { %v180_v58 = vpop.permute.xlu0 %179  }
  0x95   :  { %240 = vst.msk [vmem:[%s388_s1 + $0x8] sm:$0xff] %vm171_vm2, %v180_v58  }
  0x9c   :  { %v202_v59 = vpop.permute.xlu1 %201  }
  0x9d   :  { %242 = vst.msk [vmem:[%s388_s1 + $0x18] sm:$0xff] %vm171_vm2, %v202_v59  }

// kernel: _forward_batched.1
= control target key start
LH: loop header
LB: loop body
LE: loop exit
PB: predicated region body
PF: predicated region fallthrough
CT: control target
= control target key end

     0   :  { %s1142_s23 = smov 0   ;;  %s1250_s0 = inlined_call_operand.vmem [shape: f32[4,8,8], index: 0, kind: input, shape index: {}]   ;;  %s1251_s1 = inlined_call_operand.vmem [shape: f32[4,8,32], index: 1, kind: input, shape index: {}]   ;;  %s1252_s2 = inlined_call_operand.vmem [shape: f32[4,8,32], index: 2, kind: input, shape index: {}]   ;;  %s1253_s3 = inlined_call_operand.vmem [shape: f32[4,32,32], index: 3, kind: input, shape index: {}]   ;;  %s1254_s4 = inlined_call_operand.vmem [shape: f32[4,8,16], index: 4, kind: input, shape index: {}]   ;;  %s1255_s5 = inlined_call_operand.vmem [shape: f32[4,8,16], index: 5, kind: input, shape index: {}]   ;;  %s1256_s6 = inlined_call_operand.vmem [shape: f32[32,16], index: 6, kind: input, shape index: {}]   ;;  %s1257_s7 = inlined_call_operand.vmem [shape: f32[32,16], index: 7, kind: input, shape index: {}]   ;;  %s1258_s8 = inlined_call_operand.vmem [shape: f32[16,16], index: 8, kind: input, shape index: {}]   ;;  %s1259_s9 = inlined_call_operand.vmem [shape: f32[16,16], index: 9, kind: input, shape index: {}]   ;;  %s1260_s10 = inlined_call_operand.vmem [shape: f32[1,16], index: 10, kind: input, shape index: {}]   ;;  %s1261_s11 = inlined_call_operand.vmem [shape: f32[1,16], index: 11, kind: input, shape index: {}]   ;;  %s1262_s12 = inlined_call_operand.vmem [shape: f32[1,32], index: 12, kind: input, shape index: {}]   ;;  %s1263_s13 = inlined_call_operand.vmem [shape: f32[1,16], index: 13, kind: input, shape index: {}]   ;;  %s1264_s14 = inlined_call_operand.vmem [shape: f32[1,16], index: 14, kind: input, shape index: {}]   ;;  %s1265_s15 = inlined_call_operand.<no memory space> [shape: f32[1,1], index: 15, kind: input, shape index: {}]   ;;  %s1266_s16 = inlined_call_operand.vmem [shape: f32[4,1,1], index: 16, kind: output, shape index: {}]  }
   0x1   :  { %1267 = sst [smem:[#allocation3_spill]] %s1250_s0  ;;  %v21_v0 = vstv %s1265_s15 }
   0x2   :  { %22 = vst [vmem:[#allocation2] sm:$0x1] %v21_v0 }
   0x3 LB: > { %s1008_s24 = sadd.s32 4294967295, %s1052_s23   ;;  %p1012_p0 = scmp.ge.s32.totalorder %s1052_s23, 1  ;;  %s1052_s23 = sphi %s1142_s23, %s28_s23  }
   0x4   : > { %p509_p1 = scmp.lt.s32.totalorder %s1052_s23, 5 }
   0x6   : > { %p510_p2 = pnand %p1012_p0, %p509_p1 }
   0x7   : > { %p577_p3 = scmp.lt.s32.totalorder (!%p510_p2), %s1008_s24, 3  ;;  %s1268_s26 = sld [smem:[#allocation3_spill]] (!%p510_p2) }
   0x8   : > { %513 = sbr.rel (%p510_p2) target bundleno = 828 (0x33c), region = 84 }
   0xd   : > { %v623_v1 = vld [vmem:[%s1257_s7 + $0x18] sm:$0xff]  ;;  %v622_v3 = vld [vmem:[%s1257_s7 + $0x10] sm:$0xff]  ;;  %v621_v5 = vld [vmem:[%s1257_s7 + $0x8] sm:$0xff]  ;;  %s1270_s24 = smov (!%p577_p3, %s1008_s24), 3  ;;  %vm624_vm0 = vcmask 261120   ;;  %vm674_vm1 = vcmask 64512  }
   0xe   : > { %v619_v2 = vld [vmem:[%s1256_s6 + $0x18] sm:$0xff]  ;;  %640 = vmatpush.msra.mxu0 %v623_v1  ;;  %v618_v4 = vld [vmem:[%s1256_s6 + $0x10] sm:$0xff]  ;;  %v617_v6 = vld [vmem:[%s1256_s6 + $0x8] sm:$0xff]  ;;  %s1177_s15 = sshll.u32 %s1270_s24, 3  ;;  %s1032_s18 = sshll.u32 %s1270_s24, 5  ;;  %vm793_vm2 = vcmask 130048  }
   0xf   : > { %663 = vmatpush.msra.mxu1 %v619_v2  ;;  %v620_v7 = vld [vmem:[%s1257_s7] sm:$0xff]  ;;  %s588_s29 = scalar_lea.vmem %s1252_s2, %s1177_s15  ;;  %s584_s17 = scalar_lea.vmem %s1251_s1, %s1177_s15  ;;  %v790_v22 = vld [vmem:[%s1258_s8 + $0x8] sm:$0xff]  ;;  %vm899_vm3 = vcmask 0  }
  0x10   : > { %641 = vmatpush.msra.mxu0 %v622_v3  ;;  %v616_v8 = vld [vmem:[%s1256_s6] sm:$0xff]  ;;  %s593_s21 = scalar_lea.vmem %s1253_s3, %s1032_s18  ;;  %s580_s27 = scalar_lea.vmem %s1268_s26, %s1177_s15  ;;  %v792_v35 = vld [vmem:[%s1259_s9 + $0x8] sm:$0xff] }
  0x11   : > { %664 = vmatpush.msra.mxu1 %v618_v4  ;;  %v607_v9 = vld [vmem:[%s588_s29] sm:$0xff]  ;;  %v611_v11 = vld [vmem:[%s593_s21 + $0x18] sm:$0xff]  ;;  %v610_v12 = vld [vmem:[%s593_s21 + $0x10] sm:$0xff]  ;;  %s597_s25 = scalar_lea.vmem %s1254_s4, %s1177_s15  ;;  %s601_s19 = scalar_lea.vmem %s1255_s5, %s1177_s15 }
  0x12   : > { %642 = vmatpush.msra.mxu0 %v621_v5  ;;  %v606_v10 = vld [vmem:[%s584_s17] sm:$0xff]  ;;  %712 = vmatpush.msra.mxu3 %v611_v11  ;;  %v609_v13 = vld [vmem:[%s593_s21 + $0x8] sm:$0xff] }
  0x13   : > { %665 = vmatpush.msra.mxu1 %v617_v6  ;;  %v608_v14 = vld [vmem:[%s593_s21] sm:$0xff] }
  0x14   : > { %643 = vmatpush.msra.mxu0 %v620_v7  ;;  %713 = vmatpush.msra.mxu3 %v610_v12  ;;  %v605_v18 = vld [vmem:[%s580_s27] sm:$0xff]  ;;  %s604_s27 = scalar_lea.vmem %s1266_s16, %s1270_s24 }
  0x15   : > { %666 = vmatpush.msra.mxu1 %v616_v8  ;;  %1020 = vmatmul.msk.f32.vlgmr.msra.gmra.mxu0 %vm624_vm0, %v607_v9  ;;  %v1042_v19 = vld [vmem:[%s1262_s12] ss:$0 sm:$0xff] }
  0x16   : > { %1021 = vmatmul.msk.f32.vlgmr.msra.gmra.mxu1 %vm624_vm0, %v606_v10  ;;  %755 = vmatpush.msrb.mxu0 %v623_v1  ;;  %v869_v20 = vmul.f32 %v1042_v19, %v606_v10  ;;  %v789_v23 = vld [vmem:[%s1258_s8] sm:$0xff] }
  0x17   : > { %778 = vmatpush.msrb.mxu1 %v619_v2  ;;  %714 = vmatpush.msra.mxu3 %v609_v13  ;;  %v1041_v25 = vld [vmem:[%s1260_s10] ss:$0 sm:$0xff] }
  0x18   : > { %756 = vmatpush.msrb.mxu0 %v622_v3  ;;  %v870_v21 = vsel %vm624_vm0, %v869_v20, 0.0  ;;  %v612_v28 = vld [vmem:[%s597_s25] sm:$0xff] }
  0x19   : > { %779 = vmatpush.msrb.mxu1 %v618_v4  ;;  %715 = vmatpush.msra.mxu3 %v608_v14  ;;  %v1043_v30 = vld [vmem:[%s1263_s13] ss:$0 sm:$0xff] }
  0x1a   : > { %757 = vmatpush.msrb.mxu0 %v621_v5  ;;  %1023 = vmatmul.msk.f32.vlgmr.msra.gmra.mxu3 %vm624_vm0, %v607_v9  ;;  %v791_v36 = vld [vmem:[%s1259_s9] sm:$0xff] }
  0x1b   : > { %780 = vmatpush.msrb.mxu1 %v617_v6  ;;  %871 = vadd.xlane.f32.xlu0 %v870_v21  ;;  %v613_v41 = vld [vmem:[%s601_s19] sm:$0xff] }
  0x1c   : > { %758 = vmatpush.msrb.mxu0 %v620_v7  ;;  %811 = vmatpush.msrb.mxu3 %v792_v35  ;;  %v1044_v47 = vld [vmem:[%s1261_s11] ss:$0 sm:$0xff] }
  0x1d   : > { %781 = vmatpush.msrb.mxu1 %v616_v8  ;;  %v1045_v51 = vld [vmem:[%s1264_s14] ss:$0 sm:$0xff] }
  0x1e   : > { %812 = vmatpush.msrb.mxu3 %v791_v36  ;;  %v897_v1 = vld [vmem:[#allocation2] sm:$0x1] }
  0x8e   : > { %v872_v55 = vpop.xlane.xlu0 %871 }
  0x92   : > { %v645_v15 = vpop.f32.mrf.mxu0 }
  0x93   : > { %v668_v16 = vpop.f32.mrf.mxu1 }
  0x94   : > { %v669_v17 = vadd.f32 %v668_v16, %v645_v15 }
  0x96   : > { %693 = vmatpush.msra.mxu2 %v669_v17 }
  0x97   : > { %1022 = vmatmul.msk.f32.vlgmr.msra.gmra.mxu2 %vm674_vm1, %v605_v18 }
  0x98   : > { %732 = vmatpush.msrb.mxu2 %v611_v11 }
  0x9a   : > { %733 = vmatpush.msrb.mxu2 %v610_v12 }
  0x9c   : > { %734 = vmatpush.msrb.mxu2 %v609_v13 }
  0x9d   : > { %v717_v24 = vpop.f32.mrf.mxu3 }
  0x9e   : > { %735 = vmatpush.msrb.mxu2 %v608_v14  ;;  %1026 = vmatmul.msk.f32.vlgmr.msrb.gmra.mxu1 %vm624_vm0, %v717_v24 }
  0x9f   : > { %1024 = vmatmul.msk.f32.vlgmr.msrb.gmra.mxu2 %vm624_vm0, %v606_v10 }
  0xa0   : > { %834 = vmatpush.msra.mxu2 %v790_v22 }
  0xa2   : > { %835 = vmatpush.msra.mxu2 %v789_v23 }
 0x11a   : > { %v695_v26 = vpop.f32.mrf.mxu2 }
 0x11b   : > { %v696_v27 = vadd.f32 %v1041_v25, %v695_v26  ;;  %v783_v37 = vpop.f32.mrf.mxu1 }
 0x11d   : > { %v698_v29 = vmax.f32 %v696_v27, 0.0 }
 0x11f   : > { %v699_v31 = vmul.f32 %v698_v29, %v612_v28 }
 0x121   : > { %1028 = vmatmul.msk.f32.vlgmr.msra.gmra.mxu2 %vm793_vm2, %v699_v31  ;;  %v877_v32 = vmul.f32 %v1043_v30, %v699_v31 }
 0x122   : > { %v737_v33 = vpop.f32.mrf.mxu2 }
 0x123   : > { %1025 = vmatmul.msk.f32.vlgmr.msrb.gmra.mxu0 %vm624_vm0, %v737_v33  ;;  %v878_v34 = vsel %vm793_vm2, %v877_v32, 0.0 }
 0x124   : > { %879 = vadd.xlane.f32.xlu0 %v878_v34 }
 0x197   : > { %v880_v56 = vpop.xlane.xlu0 %879 }
 0x198   : > { %v881_v57 = vadd.f32 %v880_v56, %v872_v55 }
 0x1a0   : > { %v760_v38 = vpop.f32.mrf.mxu0 }
 0x1a1   : > { %v784_v39 = vadd.f32 %v783_v37, %v760_v38 }
 0x1a3   : > { %v786_v40 = vadd.f32 %v1041_v25, %v784_v39 }
 0x1a4   : > { %v837_v44 = vpop.f32.mrf.mxu2 }
 0x1a5   : > { %v787_v42 = vmax.f32 %v786_v40, 0.0 }
 0x1a7   : > { %v788_v43 = vmul.f32 %v787_v42, %v613_v41 }
 0x1a9   : > { %1027 = vmatmul.msk.f32.vlgmr.msrb.gmra.mxu3 %vm793_vm2, %v788_v43 }
 0x22c   : > { %v814_v45 = vpop.f32.mrf.mxu3 }
 0x22d   : > { %v838_v46 = vadd.f32 %v837_v44, %v814_v45 }
 0x22f   : > { %858 = vmatpush.msra.mxu0 %v838_v46 }
 0x230   : > { %1029 = vmatmul.msk.f32.vlgmr.msra.gmra.mxu0 %vm674_vm1, %v605_v18 }
 0x2ad   : > { %v860_v48 = vpop.f32.mrf.mxu0 }
 0x2ae   : > { %v861_v49 = vadd.f32 %v1044_v47, %v860_v48 }
 0x2b0   : > { %v863_v50 = vmax.f32 %v861_v49, 0.0 }
 0x2b2   : > { %v864_v52 = vmul.f32 %v863_v50, %v612_v28 }
 0x2b4   : > { %v886_v53 = vmul.f32 %v1045_v51, %v864_v52 }
 0x2b6   : > { %v887_v54 = vsel %vm793_vm2, %v886_v53, 0.0 }
 0x2b7   : > { %888 = vadd.xlane.f32.xlu1 %v887_v54 }
 0x32a   : > { %v889_v58 = vpop.xlane.xlu1 %888 }
 0x32b   : > { %v890_v59 = vadd.f32 %v889_v58, %v881_v57 }
 0x32d   : > { %v891_v60 = vrot.slane %v890_v59, 4 }
 0x32f   : > { %v892_v61 = vadd.f32 %v891_v60, %v890_v59 }
 0x331   : > { %v893_v62 = vrot.slane %v892_v61, 2 }
 0x333   : > { %v894_v63 = vadd.f32 %v893_v62, %v892_v61 }
 0x335   : > { %v895_v0 = vrot.slane %v894_v63, 1 }
 0x337   : > { %v896_v2 = vadd.f32 %v895_v0, %v894_v63 }
 0x339   : > { %v898_v3 = vadd.f32 %v897_v1, %v896_v2 }
 0x33b   : > { %900 = vst.msk [vmem:[%s604_s27] sm:$0x1] %vm899_vm3, %v898_v3 }
 0x33c PF: > { %s28_s23 = sadd.s32 1, %s1052_s23  }
 0x33d   : > { %p25_p4 = scmp.ge.s32.totalorder %s28_s23, 6  }
 0x33f   :  { %27 = sbr.rel (!%p25_p4) target bundleno = 3 (0x3), region = 129 }

</bundles_post_ra>
